<compile_context>
chip_gen: v7x
topology: tpu7x:2x2x1
jax: 0.10.0
libtpu: 0.0.40
codegen_flags: <defaults>
</compile_context>

<pallas_src>
import jax
import jax.numpy as jnp
from jax.experimental import pallas as pl
from jax.experimental.pallas import tpu as pltpu


# Packed-constant layout inside a single (16, 128) f32 block (lane offsets are
# 8-aligned so the in-kernel static slices are cheap):
#   cols  0:6   W1 (16, 6)  conv1.weight (k=1 squeezed), rows = out channels
#   col    8    b1 (16,)    conv1.bias
#   cols 16:32  W2 (8, 16)  conv2.weight (k=1 squeezed), rows 0:8
#   col   32    b2 (8,)     conv2.bias
#   cols 40:48  W3 (2, 8)   fc1.weight, rows 0:2
#   col   48    b3 (2,)     fc1.bias
_C1, _C2, _C3 = 6, 16, 8          # input-channel counts of the three layers
_N1, _N2, _N3 = 16, 8, 2          # output-channel counts of the three layers
_W1_OFF, _B1_OFF = 0, 8
_W2_OFF, _B2_OFF = 16, 32
_W3_OFF, _B3_OFF = 40, 48


def _fma_layer(c_ref, x, *, w_off, b_off, n_in, n_out, relu):
    """y = act(W @ x + b) as an unrolled broadcast-FMA chain on the VPU.

    x:      (n_in, TILE_B)  activations, batch on lanes
    return: (n_out, TILE_B)
    Weight columns are lane-broadcast, activation rows are sublane-broadcast;
    both feed the VALU directly (MXU would be pure padding at these sizes).
    """
    acc = c_ref[0:n_out, w_off:w_off + 1] * x[0:1, :]
    for k in range(1, n_in):                       # static unroll (6/16/8 iters)
        acc = acc + c_ref[0:n_out, w_off + k:w_off + k + 1] * x[k:k + 1, :]
    acc = acc + c_ref[0:n_out, b_off:b_off + 1]
    return jnp.maximum(acc, 0.0) if relu else acc


def _cnn_kernel(x_ref, c_ref, o_ref):
    """One batch tile; batch is on the lane (last) axis.

    x_ref: (6, TILE_B)  input, channels on sublanes
    c_ref: (16, 128)    packed weights/biases (resident across the grid)
    o_ref: (2, TILE_B)  logits
    """
    xt = x_ref[...]

    # conv1 (k=1, L=1): h1 = relu(W1 @ x + b1)
    h1 = _fma_layer(c_ref, xt, w_off=_W1_OFF, b_off=_B1_OFF,
                    n_in=_C1, n_out=_N1, relu=True)           # (16, TILE_B)
    # conv2 (k=1, L=1): h2 = relu(W2 @ h1 + b2)
    h2 = _fma_layer(c_ref, h1, w_off=_W2_OFF, b_off=_B2_OFF,
                    n_in=_C2, n_out=_N2, relu=True)           # (8, TILE_B)
    # fc1: out = W3 @ h2 + b3   (view(-1, 8) is a no-op since L == 1)
    o_ref[...] = _fma_layer(c_ref, h2, w_off=_W3_OFF, b_off=_B3_OFF,
                            n_in=_C3, n_out=_N3, relu=False)  # (2, TILE_B)


def pack_consts(params):
    """Pack PyTorch-shaped weights into one (16, 128) f32 constant block."""
    w1, b1, w2, b2, w3, b3 = params
    c = jnp.zeros((16, 128), jnp.float32)
    c = c.at[0:16, _W1_OFF:_W1_OFF + 6].set(w1[:, :, 0].astype(jnp.float32))
    c = c.at[0:16, _B1_OFF].set(b1.astype(jnp.float32))
    c = c.at[0:8, _W2_OFF:_W2_OFF + 16].set(w2[:, :, 0].astype(jnp.float32))
    c = c.at[0:8, _B2_OFF].set(b2.astype(jnp.float32))
    c = c.at[0:2, _W3_OFF:_W3_OFF + 8].set(w3.astype(jnp.float32))
    c = c.at[0:2, _B3_OFF].set(b3.astype(jnp.float32))
    return c


def cnn_forward(x_ncl, params, *, tile_b=2048):
    """x_ncl: (B, 6, 1) float32, NCL like PyTorch Conv1d.  Returns (B, 2)."""
    B = x_ncl.shape[0]
    assert x_ncl.shape[1:] == (6, 1)
    consts = pack_consts(params)

    # Glue: squeeze L=1 and put the batch on the lane axis: (B, 6, 1) -> (6, B).
    xt = jnp.transpose(x_ncl[:, :, 0].astype(jnp.float32))     # (6, B)

    # Clamp the tile so tiny batches don't over-pad; tile stays a multiple of 128.
    b128 = 128 * pl.cdiv(B, 128)
    tile_b = min(tile_b, b128)
    bp = tile_b * pl.cdiv(B, tile_b)
    if bp != B:                                    # pad the tail tile (no OOB)
        xt = jnp.pad(xt, ((0, 0), (0, bp - B)))

    # TODO(synk): on v6e/v7x the streamed x could be bf16 to halve HBM traffic;
    # kept f32 here so the same code stays optimal on v5e (no bf16 VPU path).
    out_t = pl.pallas_call(
        _cnn_kernel,
        out_shape=jax.ShapeDtypeStruct((2, bp), jnp.float32),
        grid_spec=pltpu.PrefetchScalarGridSpec(
            num_scalar_prefetch=0,
            grid=(bp // tile_b,),
            in_specs=[
                pl.BlockSpec((6, tile_b), lambda i: (0, i)),   # streamed over batch
                pl.BlockSpec((16, 128), lambda i: (0, 0)),     # weights stay resident
            ],
            out_specs=pl.BlockSpec((2, tile_b), lambda i: (0, i)),
        ),
        compiler_params=pltpu.CompilerParams(
            dimension_semantics=("parallel",)),     # v7x: shard batch over both TCs
    )(xt, consts)

    return out_t[:, :B].T                          # (B, 2)


def init_params(key):
    """Deterministic synthetic parameters with the PyTorch module's shapes."""
    k1, k2, k3, k4, k5, k6 = jax.random.split(key, 6)
    w1 = jax.random.uniform(k1, (16, 6, 1), jnp.float32, -0.4, 0.4)    # conv1.weight
    b1 = jax.random.uniform(k2, (16,), jnp.float32, -0.4, 0.4)         # conv1.bias
    w2 = jax.random.uniform(k3, (8, 16, 1), jnp.float32, -0.25, 0.25)  # conv2.weight
    b2 = jax.random.uniform(k4, (8,), jnp.float32, -0.25, 0.25)        # conv2.bias
    w3 = jax.random.uniform(k5, (2, 8), jnp.float32, -0.35, 0.35)      # fc1.weight
    b3 = jax.random.uniform(k6, (2,), jnp.float32, -0.35, 0.35)        # fc1.bias
    return (w1, b1, w2, b2, w3, b3)


def _reference(x_ncl, params):
    """Pure-JAX reference mirroring the PyTorch forward exactly."""
    w1, b1, w2, b2, w3, b3 = params
    x = x_ncl[:, :, 0]                                          # (B, 6)
    h1 = jnp.maximum(x @ w1[:, :, 0].T + b1, 0.0)               # conv1 + relu
    h2 = jnp.maximum(h1 @ w2[:, :, 0].T + b2, 0.0)              # conv2 + relu
    return h2 @ w3.T + b3                                       # fc1


if __name__ == "__main__":
    key = jax.random.PRNGKey(0)
    kx1, kx2, kp = jax.random.split(key, 3)
    params = init_params(kp)

    # Small batch (matches the module: 6 channels, length 1).
    x_small = jax.random.normal(kx1, (8, 6, 1), jnp.float32)
    out_small = cnn_forward(x_small, params)
    jax.block_until_ready(out_small)
    ref_small = _reference(x_small, params)
    assert out_small.shape == (8, 2)
    assert jnp.allclose(out_small, ref_small, atol=1e-5, rtol=1e-5)

    # Larger, non-multiple-of-tile batch exercises the tiled/pipelined path
    # (tile clamps to 1024 here -> 3 grid steps, last one padded).
    x_big = jax.random.normal(kx2, (3000, 6, 1), jnp.float32)
    out_big = cnn_forward(x_big, params, tile_b=1024)
    jax.block_until_ready(out_big)
    ref_big = _reference(x_big, params)
    assert out_big.shape == (3000, 2)
    assert jnp.allclose(out_big, ref_big, atol=1e-5, rtol=1e-5)

    print("KERNEL_OK")
</pallas_src>

<mosaic_0001>
module attributes {stable_mosaic.version = 11 : i64} {
  func.func @_cnn_kernel(%arg0: i32, %arg1: memref<6x128xf32, #tpu.memory_space<vmem>>, %arg2: memref<16x128xf32, #tpu.memory_space<vmem>>, %arg3: memref<2x128xf32, #tpu.memory_space<vmem>>) attributes {dimension_semantics = [#tpu.dimension_semantics<parallel>], iteration_bounds = array<i64: 1>, scalar_prefetch = 0 : i64, scratch_operands = 0 : i64, tpu.core_type = #tpu.core_type<tc>, window_params = [{transform_indices = @transform_0, window_bounds = array<i64: 6, 128>}, {pipeline_mode = #tpu.pipeline_mode<synchronous>, transform_indices = @transform_1, window_bounds = array<i64: 16, 128>}, {transform_indices = @transform_2, window_bounds = array<i64: 2, 128>}]} {
    %c0 = arith.constant 0 : index
    %c0_0 = arith.constant 0 : index
    %0 = vector.load %arg1[%c0, %c0_0] : memref<6x128xf32, #tpu.memory_space<vmem>>, vector<6x128xf32>
    %c0_1 = arith.constant 0 : index
    %c0_2 = arith.constant 0 : index
    %1 = vector.load %arg2[%c0_1, %c0_2] : memref<16x128xf32, #tpu.memory_space<vmem>>, vector<16x1xf32>
    %2 = vector.extract_strided_slice %0 {offsets = [0, 0], sizes = [1, 128], strides = [1, 1]} : vector<6x128xf32> to vector<1x128xf32>
    %3 = vector.broadcast %1 : vector<16x1xf32> to vector<16x128xf32>
    %4 = vector.broadcast %2 : vector<1x128xf32> to vector<16x128xf32>
    %5 = arith.mulf %3, %4 : vector<16x128xf32>
    %c0_3 = arith.constant 0 : index
    %c1 = arith.constant 1 : index
    %6 = vector.load %arg2[%c0_3, %c1] : memref<16x128xf32, #tpu.memory_space<vmem>>, vector<16x1xf32>
    %7 = vector.extract_strided_slice %0 {offsets = [1, 0], sizes = [1, 128], strides = [1, 1]} : vector<6x128xf32> to vector<1x128xf32>
    %8 = vector.broadcast %6 : vector<16x1xf32> to vector<16x128xf32>
    %9 = vector.broadcast %7 : vector<1x128xf32> to vector<16x128xf32>
    %10 = arith.mulf %8, %9 : vector<16x128xf32>
    %11 = arith.addf %5, %10 : vector<16x128xf32>
    %c0_4 = arith.constant 0 : index
    %c2 = arith.constant 2 : index
    %12 = vector.load %arg2[%c0_4, %c2] : memref<16x128xf32, #tpu.memory_space<vmem>>, vector<16x1xf32>
    %13 = vector.extract_strided_slice %0 {offsets = [2, 0], sizes = [1, 128], strides = [1, 1]} : vector<6x128xf32> to vector<1x128xf32>
    %14 = vector.broadcast %12 : vector<16x1xf32> to vector<16x128xf32>
    %15 = vector.broadcast %13 : vector<1x128xf32> to vector<16x128xf32>
    %16 = arith.mulf %14, %15 : vector<16x128xf32>
    %17 = arith.addf %11, %16 : vector<16x128xf32>
    %c0_5 = arith.constant 0 : index
    %c3 = arith.constant 3 : index
    %18 = vector.load %arg2[%c0_5, %c3] : memref<16x128xf32, #tpu.memory_space<vmem>>, vector<16x1xf32>
    %19 = vector.extract_strided_slice %0 {offsets = [3, 0], sizes = [1, 128], strides = [1, 1]} : vector<6x128xf32> to vector<1x128xf32>
    %20 = vector.broadcast %18 : vector<16x1xf32> to vector<16x128xf32>
    %21 = vector.broadcast %19 : vector<1x128xf32> to vector<16x128xf32>
    %22 = arith.mulf %20, %21 : vector<16x128xf32>
    %23 = arith.addf %17, %22 : vector<16x128xf32>
    %c0_6 = arith.constant 0 : index
    %c4 = arith.constant 4 : index
    %24 = vector.load %arg2[%c0_6, %c4] : memref<16x128xf32, #tpu.memory_space<vmem>>, vector<16x1xf32>
    %25 = vector.extract_strided_slice %0 {offsets = [4, 0], sizes = [1, 128], strides = [1, 1]} : vector<6x128xf32> to vector<1x128xf32>
    %26 = vector.broadcast %24 : vector<16x1xf32> to vector<16x128xf32>
    %27 = vector.broadcast %25 : vector<1x128xf32> to vector<16x128xf32>
    %28 = arith.mulf %26, %27 : vector<16x128xf32>
    %29 = arith.addf %23, %28 : vector<16x128xf32>
    %c0_7 = arith.constant 0 : index
    %c5 = arith.constant 5 : index
    %30 = vector.load %arg2[%c0_7, %c5] : memref<16x128xf32, #tpu.memory_space<vmem>>, vector<16x1xf32>
    %31 = vector.extract_strided_slice %0 {offsets = [5, 0], sizes = [1, 128], strides = [1, 1]} : vector<6x128xf32> to vector<1x128xf32>
    %32 = vector.broadcast %30 : vector<16x1xf32> to vector<16x128xf32>
    %33 = vector.broadcast %31 : vector<1x128xf32> to vector<16x128xf32>
    %34 = arith.mulf %32, %33 : vector<16x128xf32>
    %35 = arith.addf %29, %34 : vector<16x128xf32>
    %c0_8 = arith.constant 0 : index
    %c8 = arith.constant 8 : index
    %36 = vector.load %arg2[%c0_8, %c8] : memref<16x128xf32, #tpu.memory_space<vmem>>, vector<16x1xf32>
    %37 = vector.broadcast %36 : vector<16x1xf32> to vector<16x128xf32>
    %38 = arith.addf %35, %37 : vector<16x128xf32>
    %cst = arith.constant 0.000000e+00 : f32
    %39 = vector.broadcast %cst : f32 to vector<16x128xf32>
    %40 = arith.maximumf %38, %39 : vector<16x128xf32>
    %c0_9 = arith.constant 0 : index
    %c16 = arith.constant 16 : index
    %41 = vector.load %arg2[%c0_9, %c16] : memref<16x128xf32, #tpu.memory_space<vmem>>, vector<8x1xf32>
    %42 = vector.extract_strided_slice %40 {offsets = [0, 0], sizes = [1, 128], strides = [1, 1]} : vector<16x128xf32> to vector<1x128xf32>
    %43 = vector.broadcast %41 : vector<8x1xf32> to vector<8x128xf32>
    %44 = vector.broadcast %42 : vector<1x128xf32> to vector<8x128xf32>
    %45 = arith.mulf %43, %44 : vector<8x128xf32>
    %c0_10 = arith.constant 0 : index
    %c17 = arith.constant 17 : index
    %46 = vector.load %arg2[%c0_10, %c17] : memref<16x128xf32, #tpu.memory_space<vmem>>, vector<8x1xf32>
    %47 = vector.extract_strided_slice %40 {offsets = [1, 0], sizes = [1, 128], strides = [1, 1]} : vector<16x128xf32> to vector<1x128xf32>
    %48 = vector.broadcast %46 : vector<8x1xf32> to vector<8x128xf32>
    %49 = vector.broadcast %47 : vector<1x128xf32> to vector<8x128xf32>
    %50 = arith.mulf %48, %49 : vector<8x128xf32>
    %51 = arith.addf %45, %50 : vector<8x128xf32>
    %c0_11 = arith.constant 0 : index
    %c18 = arith.constant 18 : index
    %52 = vector.load %arg2[%c0_11, %c18] : memref<16x128xf32, #tpu.memory_space<vmem>>, vector<8x1xf32>
    %53 = vector.extract_strided_slice %40 {offsets = [2, 0], sizes = [1, 128], strides = [1, 1]} : vector<16x128xf32> to vector<1x128xf32>
    %54 = vector.broadcast %52 : vector<8x1xf32> to vector<8x128xf32>
    %55 = vector.broadcast %53 : vector<1x128xf32> to vector<8x128xf32>
    %56 = arith.mulf %54, %55 : vector<8x128xf32>
    %57 = arith.addf %51, %56 : vector<8x128xf32>
    %c0_12 = arith.constant 0 : index
    %c19 = arith.constant 19 : index
    %58 = vector.load %arg2[%c0_12, %c19] : memref<16x128xf32, #tpu.memory_space<vmem>>, vector<8x1xf32>
    %59 = vector.extract_strided_slice %40 {offsets = [3, 0], sizes = [1, 128], strides = [1, 1]} : vector<16x128xf32> to vector<1x128xf32>
    %60 = vector.broadcast %58 : vector<8x1xf32> to vector<8x128xf32>
    %61 = vector.broadcast %59 : vector<1x128xf32> to vector<8x128xf32>
    %62 = arith.mulf %60, %61 : vector<8x128xf32>
    %63 = arith.addf %57, %62 : vector<8x128xf32>
    %c0_13 = arith.constant 0 : index
    %c20 = arith.constant 20 : index
    %64 = vector.load %arg2[%c0_13, %c20] : memref<16x128xf32, #tpu.memory_space<vmem>>, vector<8x1xf32>
    %65 = vector.extract_strided_slice %40 {offsets = [4, 0], sizes = [1, 128], strides = [1, 1]} : vector<16x128xf32> to vector<1x128xf32>
    %66 = vector.broadcast %64 : vector<8x1xf32> to vector<8x128xf32>
    %67 = vector.broadcast %65 : vector<1x128xf32> to vector<8x128xf32>
    %68 = arith.mulf %66, %67 : vector<8x128xf32>
    %69 = arith.addf %63, %68 : vector<8x128xf32>
    %c0_14 = arith.constant 0 : index
    %c21 = arith.constant 21 : index
    %70 = vector.load %arg2[%c0_14, %c21] : memref<16x128xf32, #tpu.memory_space<vmem>>, vector<8x1xf32>
    %71 = vector.extract_strided_slice %40 {offsets = [5, 0], sizes = [1, 128], strides = [1, 1]} : vector<16x128xf32> to vector<1x128xf32>
    %72 = vector.broadcast %70 : vector<8x1xf32> to vector<8x128xf32>
    %73 = vector.broadcast %71 : vector<1x128xf32> to vector<8x128xf32>
    %74 = arith.mulf %72, %73 : vector<8x128xf32>
    %75 = arith.addf %69, %74 : vector<8x128xf32>
    %c0_15 = arith.constant 0 : index
    %c22 = arith.constant 22 : index
    %76 = vector.load %arg2[%c0_15, %c22] : memref<16x128xf32, #tpu.memory_space<vmem>>, vector<8x1xf32>
    %77 = vector.extract_strided_slice %40 {offsets = [6, 0], sizes = [1, 128], strides = [1, 1]} : vector<16x128xf32> to vector<1x128xf32>
    %78 = vector.broadcast %76 : vector<8x1xf32> to vector<8x128xf32>
    %79 = vector.broadcast %77 : vector<1x128xf32> to vector<8x128xf32>
    %80 = arith.mulf %78, %79 : vector<8x128xf32>
    %81 = arith.addf %75, %80 : vector<8x128xf32>
    %c0_16 = arith.constant 0 : index
    %c23 = arith.constant 23 : index
    %82 = vector.load %arg2[%c0_16, %c23] : memref<16x128xf32, #tpu.memory_space<vmem>>, vector<8x1xf32>
    %83 = vector.extract_strided_slice %40 {offsets = [7, 0], sizes = [1, 128], strides = [1, 1]} : vector<16x128xf32> to vector<1x128xf32>
    %84 = vector.broadcast %82 : vector<8x1xf32> to vector<8x128xf32>
    %85 = vector.broadcast %83 : vector<1x128xf32> to vector<8x128xf32>
    %86 = arith.mulf %84, %85 : vector<8x128xf32>
    %87 = arith.addf %81, %86 : vector<8x128xf32>
    %c0_17 = arith.constant 0 : index
    %c24 = arith.constant 24 : index
    %88 = vector.load %arg2[%c0_17, %c24] : memref<16x128xf32, #tpu.memory_space<vmem>>, vector<8x1xf32>
    %89 = vector.extract_strided_slice %40 {offsets = [8, 0], sizes = [1, 128], strides = [1, 1]} : vector<16x128xf32> to vector<1x128xf32>
    %90 = vector.broadcast %88 : vector<8x1xf32> to vector<8x128xf32>
    %91 = vector.broadcast %89 : vector<1x128xf32> to vector<8x128xf32>
    %92 = arith.mulf %90, %91 : vector<8x128xf32>
    %93 = arith.addf %87, %92 : vector<8x128xf32>
    %c0_18 = arith.constant 0 : index
    %c25 = arith.constant 25 : index
    %94 = vector.load %arg2[%c0_18, %c25] : memref<16x128xf32, #tpu.memory_space<vmem>>, vector<8x1xf32>
    %95 = vector.extract_strided_slice %40 {offsets = [9, 0], sizes = [1, 128], strides = [1, 1]} : vector<16x128xf32> to vector<1x128xf32>
    %96 = vector.broadcast %94 : vector<8x1xf32> to vector<8x128xf32>
    %97 = vector.broadcast %95 : vector<1x128xf32> to vector<8x128xf32>
    %98 = arith.mulf %96, %97 : vector<8x128xf32>
    %99 = arith.addf %93, %98 : vector<8x128xf32>
    %c0_19 = arith.constant 0 : index
    %c26 = arith.constant 26 : index
    %100 = vector.load %arg2[%c0_19, %c26] : memref<16x128xf32, #tpu.memory_space<vmem>>, vector<8x1xf32>
    %101 = vector.extract_strided_slice %40 {offsets = [10, 0], sizes = [1, 128], strides = [1, 1]} : vector<16x128xf32> to vector<1x128xf32>
    %102 = vector.broadcast %100 : vector<8x1xf32> to vector<8x128xf32>
    %103 = vector.broadcast %101 : vector<1x128xf32> to vector<8x128xf32>
    %104 = arith.mulf %102, %103 : vector<8x128xf32>
    %105 = arith.addf %99, %104 : vector<8x128xf32>
    %c0_20 = arith.constant 0 : index
    %c27 = arith.constant 27 : index
    %106 = vector.load %arg2[%c0_20, %c27] : memref<16x128xf32, #tpu.memory_space<vmem>>, vector<8x1xf32>
    %107 = vector.extract_strided_slice %40 {offsets = [11, 0], sizes = [1, 128], strides = [1, 1]} : vector<16x128xf32> to vector<1x128xf32>
    %108 = vector.broadcast %106 : vector<8x1xf32> to vector<8x128xf32>
    %109 = vector.broadcast %107 : vector<1x128xf32> to vector<8x128xf32>
    %110 = arith.mulf %108, %109 : vector<8x128xf32>
    %111 = arith.addf %105, %110 : vector<8x128xf32>
    %c0_21 = arith.constant 0 : index
    %c28 = arith.constant 28 : index
    %112 = vector.load %arg2[%c0_21, %c28] : memref<16x128xf32, #tpu.memory_space<vmem>>, vector<8x1xf32>
    %113 = vector.extract_strided_slice %40 {offsets = [12, 0], sizes = [1, 128], strides = [1, 1]} : vector<16x128xf32> to vector<1x128xf32>
    %114 = vector.broadcast %112 : vector<8x1xf32> to vector<8x128xf32>
    %115 = vector.broadcast %113 : vector<1x128xf32> to vector<8x128xf32>
    %116 = arith.mulf %114, %115 : vector<8x128xf32>
    %117 = arith.addf %111, %116 : vector<8x128xf32>
    %c0_22 = arith.constant 0 : index
    %c29 = arith.constant 29 : index
    %118 = vector.load %arg2[%c0_22, %c29] : memref<16x128xf32, #tpu.memory_space<vmem>>, vector<8x1xf32>
    %119 = vector.extract_strided_slice %40 {offsets = [13, 0], sizes = [1, 128], strides = [1, 1]} : vector<16x128xf32> to vector<1x128xf32>
    %120 = vector.broadcast %118 : vector<8x1xf32> to vector<8x128xf32>
    %121 = vector.broadcast %119 : vector<1x128xf32> to vector<8x128xf32>
    %122 = arith.mulf %120, %121 : vector<8x128xf32>
    %123 = arith.addf %117, %122 : vector<8x128xf32>
    %c0_23 = arith.constant 0 : index
    %c30 = arith.constant 30 : index
    %124 = vector.load %arg2[%c0_23, %c30] : memref<16x128xf32, #tpu.memory_space<vmem>>, vector<8x1xf32>
    %125 = vector.extract_strided_slice %40 {offsets = [14, 0], sizes = [1, 128], strides = [1, 1]} : vector<16x128xf32> to vector<1x128xf32>
    %126 = vector.broadcast %124 : vector<8x1xf32> to vector<8x128xf32>
    %127 = vector.broadcast %125 : vector<1x128xf32> to vector<8x128xf32>
    %128 = arith.mulf %126, %127 : vector<8x128xf32>
    %129 = arith.addf %123, %128 : vector<8x128xf32>
    %c0_24 = arith.constant 0 : index
    %c31 = arith.constant 31 : index
    %130 = vector.load %arg2[%c0_24, %c31] : memref<16x128xf32, #tpu.memory_space<vmem>>, vector<8x1xf32>
    %131 = vector.extract_strided_slice %40 {offsets = [15, 0], sizes = [1, 128], strides = [1, 1]} : vector<16x128xf32> to vector<1x128xf32>
    %132 = vector.broadcast %130 : vector<8x1xf32> to vector<8x128xf32>
    %133 = vector.broadcast %131 : vector<1x128xf32> to vector<8x128xf32>
    %134 = arith.mulf %132, %133 : vector<8x128xf32>
    %135 = arith.addf %129, %134 : vector<8x128xf32>
    %c0_25 = arith.constant 0 : index
    %c32 = arith.constant 32 : index
    %136 = vector.load %arg2[%c0_25, %c32] : memref<16x128xf32, #tpu.memory_space<vmem>>, vector<8x1xf32>
    %137 = vector.broadcast %136 : vector<8x1xf32> to vector<8x128xf32>
    %138 = arith.addf %135, %137 : vector<8x128xf32>
    %cst_26 = arith.constant 0.000000e+00 : f32
    %139 = vector.broadcast %cst_26 : f32 to vector<8x128xf32>
    %140 = arith.maximumf %138, %139 : vector<8x128xf32>
    %c0_27 = arith.constant 0 : index
    %c40 = arith.constant 40 : index
    %141 = vector.load %arg2[%c0_27, %c40] : memref<16x128xf32, #tpu.memory_space<vmem>>, vector<2x1xf32>
    %142 = vector.extract_strided_slice %140 {offsets = [0, 0], sizes = [1, 128], strides = [1, 1]} : vector<8x128xf32> to vector<1x128xf32>
    %143 = vector.broadcast %141 : vector<2x1xf32> to vector<2x128xf32>
    %144 = vector.broadcast %142 : vector<1x128xf32> to vector<2x128xf32>
    %145 = arith.mulf %143, %144 : vector<2x128xf32>
    %c0_28 = arith.constant 0 : index
    %c41 = arith.constant 41 : index
    %146 = vector.load %arg2[%c0_28, %c41] : memref<16x128xf32, #tpu.memory_space<vmem>>, vector<2x1xf32>
    %147 = vector.extract_strided_slice %140 {offsets = [1, 0], sizes = [1, 128], strides = [1, 1]} : vector<8x128xf32> to vector<1x128xf32>
    %148 = vector.broadcast %146 : vector<2x1xf32> to vector<2x128xf32>
    %149 = vector.broadcast %147 : vector<1x128xf32> to vector<2x128xf32>
    %150 = arith.mulf %148, %149 : vector<2x128xf32>
    %151 = arith.addf %145, %150 : vector<2x128xf32>
    %c0_29 = arith.constant 0 : index
    %c42 = arith.constant 42 : index
    %152 = vector.load %arg2[%c0_29, %c42] : memref<16x128xf32, #tpu.memory_space<vmem>>, vector<2x1xf32>
    %153 = vector.extract_strided_slice %140 {offsets = [2, 0], sizes = [1, 128], strides = [1, 1]} : vector<8x128xf32> to vector<1x128xf32>
    %154 = vector.broadcast %152 : vector<2x1xf32> to vector<2x128xf32>
    %155 = vector.broadcast %153 : vector<1x128xf32> to vector<2x128xf32>
    %156 = arith.mulf %154, %155 : vector<2x128xf32>
    %157 = arith.addf %151, %156 : vector<2x128xf32>
    %c0_30 = arith.constant 0 : index
    %c43 = arith.constant 43 : index
    %158 = vector.load %arg2[%c0_30, %c43] : memref<16x128xf32, #tpu.memory_space<vmem>>, vector<2x1xf32>
    %159 = vector.extract_strided_slice %140 {offsets = [3, 0], sizes = [1, 128], strides = [1, 1]} : vector<8x128xf32> to vector<1x128xf32>
    %160 = vector.broadcast %158 : vector<2x1xf32> to vector<2x128xf32>
    %161 = vector.broadcast %159 : vector<1x128xf32> to vector<2x128xf32>
    %162 = arith.mulf %160, %161 : vector<2x128xf32>
    %163 = arith.addf %157, %162 : vector<2x128xf32>
    %c0_31 = arith.constant 0 : index
    %c44 = arith.constant 44 : index
    %164 = vector.load %arg2[%c0_31, %c44] : memref<16x128xf32, #tpu.memory_space<vmem>>, vector<2x1xf32>
    %165 = vector.extract_strided_slice %140 {offsets = [4, 0], sizes = [1, 128], strides = [1, 1]} : vector<8x128xf32> to vector<1x128xf32>
    %166 = vector.broadcast %164 : vector<2x1xf32> to vector<2x128xf32>
    %167 = vector.broadcast %165 : vector<1x128xf32> to vector<2x128xf32>
    %168 = arith.mulf %166, %167 : vector<2x128xf32>
    %169 = arith.addf %163, %168 : vector<2x128xf32>
    %c0_32 = arith.constant 0 : index
    %c45 = arith.constant 45 : index
    %170 = vector.load %arg2[%c0_32, %c45] : memref<16x128xf32, #tpu.memory_space<vmem>>, vector<2x1xf32>
    %171 = vector.extract_strided_slice %140 {offsets = [5, 0], sizes = [1, 128], strides = [1, 1]} : vector<8x128xf32> to vector<1x128xf32>
    %172 = vector.broadcast %170 : vector<2x1xf32> to vector<2x128xf32>
    %173 = vector.broadcast %171 : vector<1x128xf32> to vector<2x128xf32>
    %174 = arith.mulf %172, %173 : vector<2x128xf32>
    %175 = arith.addf %169, %174 : vector<2x128xf32>
    %c0_33 = arith.constant 0 : index
    %c46 = arith.constant 46 : index
    %176 = vector.load %arg2[%c0_33, %c46] : memref<16x128xf32, #tpu.memory_space<vmem>>, vector<2x1xf32>
    %177 = vector.extract_strided_slice %140 {offsets = [6, 0], sizes = [1, 128], strides = [1, 1]} : vector<8x128xf32> to vector<1x128xf32>
    %178 = vector.broadcast %176 : vector<2x1xf32> to vector<2x128xf32>
    %179 = vector.broadcast %177 : vector<1x128xf32> to vector<2x128xf32>
    %180 = arith.mulf %178, %179 : vector<2x128xf32>
    %181 = arith.addf %175, %180 : vector<2x128xf32>
    %c0_34 = arith.constant 0 : index
    %c47 = arith.constant 47 : index
    %182 = vector.load %arg2[%c0_34, %c47] : memref<16x128xf32, #tpu.memory_space<vmem>>, vector<2x1xf32>
    %183 = vector.extract_strided_slice %140 {offsets = [7, 0], sizes = [1, 128], strides = [1, 1]} : vector<8x128xf32> to vector<1x128xf32>
    %184 = vector.broadcast %182 : vector<2x1xf32> to vector<2x128xf32>
    %185 = vector.broadcast %183 : vector<1x128xf32> to vector<2x128xf32>
    %186 = arith.mulf %184, %185 : vector<2x128xf32>
    %187 = arith.addf %181, %186 : vector<2x128xf32>
    %c0_35 = arith.constant 0 : index
    %c48 = arith.constant 48 : index
    %188 = vector.load %arg2[%c0_35, %c48] : memref<16x128xf32, #tpu.memory_space<vmem>>, vector<2x1xf32>
    %189 = vector.broadcast %188 : vector<2x1xf32> to vector<2x128xf32>
    %190 = arith.addf %187, %189 : vector<2x128xf32>
    %c0_36 = arith.constant 0 : index
    %c0_37 = arith.constant 0 : index
    %191 = vector.load %arg3[%c0_36, %c0_37] : memref<2x128xf32, #tpu.memory_space<vmem>>, vector<2x128xf32>
    tpu.vector_store %arg3[%c0_36, %c0_37], %190 {strides = array<i32>} : memref<2x128xf32, #tpu.memory_space<vmem>>, vector<2x128xf32>,
    return
  }
  func.func @transform_0(%arg0: i32) -> (i32, i32) {
    %c0_i32 = arith.constant 0 : i32
    %c0_i32_0 = arith.constant 0 : i32
    return %c0_i32, %arg0 : i32, i32
  }
  func.func @transform_1(%arg0: i32) -> (i32, i32) {
    %c0_i32 = arith.constant 0 : i32
    %c0_i32_0 = arith.constant 0 : i32
    %c0_i32_1 = arith.constant 0 : i32
    return %c0_i32, %c0_i32_0 : i32, i32
  }
  func.func @transform_2(%arg0: i32) -> (i32, i32) {
    %c0_i32 = arith.constant 0 : i32
    %c0_i32_0 = arith.constant 0 : i32
    return %c0_i32, %arg0 : i32, i32
  }
}

</mosaic_0001>

<bundles_post_ra>
// kernel: tpu_custom_call.1
= control target key start
LH: loop header
LB: loop body
LE: loop exit
PB: predicated region body
PF: predicated region fallthrough
CT: control target
= control target key end

     0   :  { %7 = vsyncpa [#allocation3], 0  ;;  %s745_s0 = inlined_call_operand.hbm [shape: f32[6,128], index: 0, kind: input, shape index: {}]   ;;  %s746_s1 = inlined_call_operand.hbm [shape: f32[16,128], index: 1, kind: input, shape index: {}]   ;;  %s747_s2 = inlined_call_operand.hbm [shape: f32[2,128], index: 2, kind: output, shape index: {}]  }
   0x1   :  { %8 = vsyncpa [#allocation6], 0 }
   0x2   :  { %9 = vsyncpa [#allocation4], 0  ;;  %s567_s9 = smov [#allocation2]   ;;  %s568_s11 = smov [#allocation5]  }
   0x3   :  { %s16_s10 = sshll.u32 %s567_s9, 4  ;;  %s25_s12 = sshll.u32 %s568_s11, 4  ;;  %s17_s10 = int_to_ptr.vmem [resolvable:$true] %s16_s10  ;;  %s620_s12 = int_to_ptr.vmem [resolvable:$true] %s25_s12 }
   0x4   :  { %s495_s15 = scalar_lea.hbm %s745_s0, 128 }
   0x5   :  { %p496_p0 = scmp.ne.s32.totalorder %s745_s0, %s495_s15  ;;  %p499_p1 = scmp.lt.u32.totalorder %s495_s15, %s745_s0 }
   0x7   :  { %p501_p2 = pnand %p499_p1, %p496_p0 }
   0x9   :  { %504 = shalt.err (!%p501_p2)
}
   0xa   :  { %s505_s20 = scalar_lea.vmem %s17_s10, 128  ;;  %p510_p4 = scmp.lt.s32.totalorder %s17_s10, %s17_s10 }
   0xb   :  { %p506_p3 = scmp.ne.s32.totalorder %s17_s10, %s505_s20  ;;  %p511_p5 = scmp.lt.s32.totalorder %s505_s20, %s505_s20 }
   0xd   :  { %p512_p6 = por %p511_p5, %p510_p4 }
   0xf   :  { %p513_p7 = pnand %p512_p6, %p506_p3 }
  0x11   :  { %516 = shalt.err (!%p513_p7)
}
  0x12   :  { %19 = dma.hbm_to_vmem [thread:$0]  %s745_s0, 128, %s17_s10, [#allocation3]  }
  0x13   :  { %s517_s25 = scalar_lea.hbm %s746_s1, 256 }
  0x14   :  { %p518_p8 = scmp.ne.s32.totalorder %s746_s1, %s517_s25  ;;  %p521_p9 = scmp.lt.u32.totalorder %s517_s25, %s746_s1 }
  0x16   :  { %p523_p10 = pnand %p521_p9, %p518_p8 }
  0x18   :  { %526 = shalt.err (!%p523_p10)
}
  0x19   :  { %s527_s30 = scalar_lea.vmem %s620_s12, 256  ;;  %p532_p12 = scmp.lt.s32.totalorder %s620_s12, %s620_s12 }
  0x1a   :  { %p528_p11 = scmp.ne.s32.totalorder %s620_s12, %s527_s30  ;;  %p533_p13 = scmp.lt.s32.totalorder %s527_s30, %s527_s30 }
  0x1c   :  { %p534_p0 = por %p533_p13, %p532_p12 }
  0x1e   :  { %p535_p1 = pnand %p534_p0, %p528_p11 }
  0x20   :  { %538 = shalt.err (!%p535_p1)
}
  0x21   :  { %s569_s0 = smov 128   ;;  %s570_s3 = smov 8  }
  0x22   :  { %31 = dma.hbm_to_vmem [thread:$0]  %s746_s1, 256, %s620_s12, [#allocation6], %s569_s0, %s569_s0, %s570_s3  }
  0x23   :  { %561 = dma.done.wait [#allocation3], 128  }
  0x24   :  { %562 = vsyncadd [#allocation3], 4294967168 }
  0x25   :  { %563 = dma.done.wait [#allocation6], 256  }
  0x26   :  { %564 = vsyncadd [#allocation6], 4294967040  ;;  %v571_v0 = vmov 1   ;;  %v572_v1 = vmov 0   ;;  %v651_v2 = vld [vmem:[#allocation5] sm:$0xff]  ;;  %v40_v3 = vld [vmem:[#allocation5 + $0x8] sm:$0xff]  ;;  %v51_v38 = vlaneseq }
  0x27   :  { %458 = vset.pattern.permute.xlu1 %v571_v0  ;;  %457 = vset.pattern.permute.xlu0 %v572_v1  ;;  %v573_v4 = vmov 2   ;;  %v574_v5 = vmov 3   ;;  %v575_v6 = vmov 5   ;;  %v576_v7 = vmov 4   ;;  %v316_v18 = vld [vmem:[#allocation5] sm:$0x3] }
  0x28   :  { %58 = vperm.xlu1 %458, %v651_v2   ;;  %43 = vperm.xlu0 %457, %v651_v2   ;;  %v577_v8 = vmov 8   ;;  %v578_v9 = vmov 19   ;;  %v579_v10 = vmov 16   ;;  %v580_v11 = vmov 21   ;;  %v38_v46 = vld [vmem:[#allocation2] sm:$0x3f] }
  0x29   :  { %v581_v12 = vmov 17   ;;  %v582_v13 = vmov 24   ;;  %v583_v14 = vmov 18   ;;  %v584_v15 = vmov 27   ;;  %s604_s1 = smov [#allocation7]  }
  0x2a   :  { %v585_v16 = vmov 30   ;;  %v586_v17 = vmov 20   ;;  %v587_v19 = vmov 40   ;;  %v588_v20 = vmov 43   ;;  %s409_s6 = sshll.u32 %s604_s1, 4  ;;  %s410_s6 = int_to_ptr.vmem [resolvable:$true] %s409_s6 }
  0x2b   :  { %v589_v21 = vmov 22   ;;  %v590_v22 = vmov 46   ;;  %v591_v23 = vmov 23   ;;  %v592_v24 = vmov 48   ;;  %s539_s7 = scalar_lea.vmem %s410_s6, 32  ;;  %p544_p3 = scmp.lt.s32.totalorder %s410_s6, %s410_s6 }
  0x2c   :  { %62 = vperm.xlu1 %458, %v40_v3   ;;  %48 = vperm.xlu0 %457, %v40_v3   ;;  %v593_v25 = vmov 25   ;;  %v594_v26 = vmov 26   ;;  %v595_v27 = vmov 28   ;;  %v596_v28 = vmov 29   ;;  %p540_p2 = scmp.ne.s32.totalorder %s410_s6, %s539_s7  ;;  %p545_p4 = scmp.lt.s32.totalorder %s539_s7, %s539_s7 }
  0x2d   :  { %v597_v29 = vmov 31   ;;  %v598_v30 = vmov 32   ;;  %v599_v31 = vmov 41   ;;  %v600_v32 = vmov 42  }
  0x2e   :  { %v601_v33 = vmov 44   ;;  %v602_v34 = vmov 45   ;;  %v603_v35 = vmov 47   ;;  %v677_v41 = vshrl.u32 %v51_v38, 7  ;;  %p546_p5 = por %p545_p4, %p544_p3 }
  0x30   :  { %460 = vset.pattern.permute.xlu1 %v573_v4  ;;  %459 = vset.pattern.permute.xlu0 %v573_v4  ;;  %v680_v44 = vsub.s32 1, %v677_v41  ;;  %v683_v45 = vsub.s32 0, %v677_v41  ;;  %v686_v47 = vsub.s32 2, %v677_v41  ;;  %v691_v51 = vsub.s32 3, %v677_v41  ;;  %p547_p6 = pnand %p546_p5, %p540_p2 }
  0x31   :  { %78 = vperm.xlu1 %460, %v40_v3   ;;  %74 = vperm.xlu0 %459, %v651_v2   ;;  %v695_v54 = vsub.s32 4, %v677_v41  ;;  %v700_v0 = vsub.s32 5, %v677_v41 }
  0x32   :  { %v68_v49 = vrot.slane %v38_v46, %v680_v44  ;;  %v54_v50 = vrot.slane %v38_v46, %v683_v45  ;;  %v84_v53 = vrot.slane %v38_v46, %v686_v47  ;;  %v100_v57 = vrot.slane %v38_v46, %v691_v51 }
  0x33   :  { %v116_v60 = vrot.slane %v38_v46, %v695_v54 }
  0x35   :  { %461 = vset.pattern.permute.xlu1 %v574_v5  ;;  %464 = vset.pattern.permute.xlu0 %v574_v5  ;;  %v132_v5 = vrot.slane %v38_v46, %v700_v0 }
  0x36   :  { %90 = vperm.xlu1 %461, %v651_v2   ;;  %94 = vperm.xlu0 %464, %v40_v3  }
  0x3a   :  { %462 = vset.pattern.permute.xlu1 %v575_v6  ;;  %465 = vset.pattern.permute.xlu0 %v576_v7 }
  0x3b   :  { %122 = vperm.xlu1 %462, %v651_v2   ;;  %106 = vperm.xlu0 %465, %v651_v2  }
  0x3f   :  { %463 = vset.pattern.permute.xlu1 %v577_v8  ;;  %110 = vperm.xlu0 %465, %v40_v3  }
  0x40   :  { %138 = vperm.xlu1 %463, %v651_v2  }
  0x43   :  { %470 = vset.pattern.permute.xlu0 %v578_v9 }
  0x44   :  { %466 = vset.pattern.permute.xlu1 %v579_v10  ;;  %181 = vperm.xlu0 %470, %v651_v2  }
  0x45   :  { %152 = vperm.xlu1 %466, %v651_v2  }
  0x48   :  { %473 = vset.pattern.permute.xlu0 %v580_v11 }
  0x49   :  { %467 = vset.pattern.permute.xlu1 %v581_v12  ;;  %201 = vperm.xlu0 %473, %v651_v2  }
  0x4a   :  { %161 = vperm.xlu1 %467, %v651_v2  }
  0x4d   :  { %476 = vset.pattern.permute.xlu0 %v582_v13 }
  0x4e   :  { %468 = vset.pattern.permute.xlu1 %v583_v14  ;;  %231 = vperm.xlu0 %476, %v651_v2  }
  0x4f   :  { %171 = vperm.xlu1 %468, %v651_v2  }
  0x52   :  { %479 = vset.pattern.permute.xlu0 %v584_v15 }
  0x53   :  { %469 = vset.pattern.permute.xlu1 %v575_v6  ;;  %261 = vperm.xlu0 %479, %v651_v2  }
  0x54   :  { %126 = vperm.xlu1 %469, %v40_v3  }
  0x57   :  { %482 = vset.pattern.permute.xlu0 %v585_v16 }
  0x58   :  { %471 = vset.pattern.permute.xlu1 %v586_v17  ;;  %291 = vperm.xlu0 %482, %v651_v2  }
  0x59   :  { %191 = vperm.xlu1 %471, %v651_v2  }
  0x5c   :  { %485 = vset.pattern.permute.xlu0 %v587_v19 }
  0x5d   :  { %472 = vset.pattern.permute.xlu1 %v577_v8  ;;  %319 = vperm.xlu0 %485, %v316_v18  }
  0x5e   :  { %142 = vperm.xlu1 %472, %v40_v3  }
  0x61   :  { %488 = vset.pattern.permute.xlu0 %v588_v20 }
  0x62   :  { %474 = vset.pattern.permute.xlu1 %v589_v21  ;;  %348 = vperm.xlu0 %488, %v316_v18  }
  0x63   :  { %211 = vperm.xlu1 %474, %v651_v2  }
  0x66   :  { %491 = vset.pattern.permute.xlu0 %v590_v22 }
  0x67   :  { %475 = vset.pattern.permute.xlu1 %v591_v23  ;;  %378 = vperm.xlu0 %491, %v316_v18  }
  0x68   :  { %221 = vperm.xlu1 %475, %v651_v2  }
  0x6b   :  { %494 = vset.pattern.permute.xlu0 %v592_v24 }
  0x6c   :  { %477 = vset.pattern.permute.xlu1 %v593_v25 }
  0x6d   :  { %241 = vperm.xlu1 %477, %v651_v2  }
  0x71   :  { %478 = vset.pattern.permute.xlu1 %v594_v26 }
  0x72   :  { %251 = vperm.xlu1 %478, %v651_v2  }
  0x76   :  { %480 = vset.pattern.permute.xlu1 %v595_v27 }
  0x77   :  { %271 = vperm.xlu1 %480, %v651_v2  }
  0x7b   :  { %481 = vset.pattern.permute.xlu1 %v596_v28 }
  0x7c   :  { %281 = vperm.xlu1 %481, %v651_v2  }
  0x80   :  { %483 = vset.pattern.permute.xlu1 %v597_v29 }
  0x81   :  { %301 = vperm.xlu1 %483, %v651_v2  }
  0x85   :  { %484 = vset.pattern.permute.xlu1 %v598_v30 }
  0x86   :  { %311 = vperm.xlu1 %484, %v651_v2  }
  0x8a   :  { %486 = vset.pattern.permute.xlu1 %v599_v31 }
  0x8b   :  { %328 = vperm.xlu1 %486, %v316_v18  }
  0x8f   :  { %487 = vset.pattern.permute.xlu1 %v600_v32 }
  0x90   :  { %338 = vperm.xlu1 %487, %v316_v18  }
  0x94   :  { %489 = vset.pattern.permute.xlu1 %v601_v33 }
  0x95   :  { %358 = vperm.xlu1 %489, %v316_v18  }
  0x99   :  { %490 = vset.pattern.permute.xlu1 %v602_v34 }
  0x9a   :  { %368 = vperm.xlu1 %490, %v316_v18  }
  0x9e   :  { %492 = vset.pattern.permute.xlu1 %v603_v35 }
  0x9f   :  { %388 = vperm.xlu1 %492, %v316_v18  }
  0xa3   :  { %493 = vset.pattern.permute.xlu1 %v592_v24 }
  0xa4   :  { %398 = vperm.xlu1 %493, %v316_v18  }
  0xa7   :  { %v59_v36 = vpop.permute.xlu1 %58  ;;  %v44_v37 = vpop.permute.xlu0 %43 }
  0xa8   :  { %v69_v55 = vmul.f32 %v68_v49, %v59_v36  ;;  %v55_v56 = vmul.f32 %v54_v50, %v44_v37 }
  0xaa   :  { %v71_v62 = vadd.f32 %v69_v55, %v55_v56  ;;  %v714_v56 = vsub.s32 7, %v677_v41 }
  0xab   :  { %v63_v39 = vpop.permute.xlu1 %62  ;;  %v49_v40 = vpop.permute.xlu0 %48 }
  0xac   :  { %v70_v14 = vmul.f32 %v68_v49, %v63_v39  ;;  %v56_v15 = vmul.f32 %v54_v50, %v49_v40 }
  0xae   :  { %v72_v21 = vadd.f32 %v70_v14, %v56_v15 }
  0xb0   :  { %v79_v42 = vpop.permute.xlu1 %78  ;;  %v75_v43 = vpop.permute.xlu0 %74 }
  0xb1   :  { %v85_v59 = vmul.f32 %v84_v53, %v75_v43  ;;  %v86_v17 = vmul.f32 %v84_v53, %v79_v42  ;;  %v709_v43 = vsub.s32 6, %v677_v41 }
  0xb3   :  { %v87_v2 = vadd.f32 %v85_v59, %v71_v62  ;;  %v88_v25 = vadd.f32 %v86_v17, %v72_v21 }
  0xb5   :  { %v91_v48 = vpop.permute.xlu1 %90  ;;  %v95_v52 = vpop.permute.xlu0 %94 }
  0xb6   :  { %v101_v63 = vmul.f32 %v100_v57, %v91_v48  ;;  %v102_v22 = vmul.f32 %v100_v57, %v95_v52 }
  0xb8   :  { %v103_v4 = vadd.f32 %v101_v63, %v87_v2  ;;  %v104_v30 = vadd.f32 %v102_v22, %v88_v25 }
  0xba   :  { %v123_v58 = vpop.permute.xlu1 %122  ;;  %v107_v61 = vpop.permute.xlu0 %106 }
  0xbb   :  { %v117_v3 = vmul.f32 %v116_v60, %v107_v61  ;;  %v133_v8 = vmul.f32 %v132_v5, %v123_v58 }
  0xbd   :  { %v119_v6 = vadd.f32 %v117_v3, %v103_v4 }
  0xbe   :  { %v111_v20 = vpop.permute.xlu0 %110 }
  0xbf   :  { %v139_v1 = vpop.permute.xlu1 %138  ;;  %v135_v9 = vadd.f32 %v133_v8, %v119_v6  ;;  %v118_v26 = vmul.f32 %v116_v60, %v111_v20 }
  0xc1   :  { %v145_v11 = vadd.f32 %v139_v1, %v135_v9  ;;  %v120_v35 = vadd.f32 %v118_v26, %v104_v30 }
  0xc3   :  { %v147_v13 = vmax.f32 %v145_v11, 0.0  ;;  %v182_v34 = vpop.permute.xlu0 %181 }
  0xc4   :  { %v153_v7 = vpop.permute.xlu1 %152 }
  0xc5   :  { %v158_v18 = vrot.slane %v147_v13, %v683_v45  ;;  %v167_v19 = vrot.slane %v147_v13, %v680_v44  ;;  %v177_v24 = vrot.slane %v147_v13, %v686_v47  ;;  %v187_v31 = vrot.slane %v147_v13, %v691_v51 }
  0xc6   :  { %v197_v37 = vrot.slane %v147_v13, %v695_v54  ;;  %v207_v50 = vrot.slane %v147_v13, %v700_v0  ;;  %v217_v55 = vrot.slane %v147_v13, %v709_v43  ;;  %v227_v61 = vrot.slane %v147_v13, %v714_v56 }
  0xc7   :  { %v159_v27 = vmul.f32 %v158_v18, %v153_v7  ;;  %v188_v39 = vmul.f32 %v187_v31, %v182_v34 }
  0xc8   :  { %v202_v49 = vpop.permute.xlu0 %201 }
  0xc9   :  { %v162_v10 = vpop.permute.xlu1 %161  ;;  %v208_v57 = vmul.f32 %v207_v50, %v202_v49 }
  0xca   :  { %v168_v23 = vmul.f32 %v167_v19, %v162_v10 }
  0xcc   :  { %v169_v32 = vadd.f32 %v168_v23, %v159_v27 }
  0xcd   :  { %v232_v4 = vpop.permute.xlu0 %231 }
  0xce   :  { %v172_v12 = vpop.permute.xlu1 %171 }
  0xcf   :  { %v178_v28 = vmul.f32 %v177_v24, %v172_v12 }
  0xd1   :  { %v179_v36 = vadd.f32 %v178_v28, %v169_v32 }
  0xd2   :  { %v262_v15 = vpop.permute.xlu0 %261 }
  0xd3   :  { %v127_v16 = vpop.permute.xlu1 %126  ;;  %v189_v46 = vadd.f32 %v188_v39, %v179_v36 }
  0xd4   :  { %v134_v33 = vmul.f32 %v132_v5, %v127_v16 }
  0xd6   :  { %v136_v42 = vadd.f32 %v134_v33, %v120_v35 }
  0xd7   :  { %v292_v23 = vpop.permute.xlu0 %291 }
  0xd8   :  { %v192_v29 = vpop.permute.xlu1 %191 }
  0xd9   :  { %v198_v40 = vmul.f32 %v197_v37, %v192_v29 }
  0xdb   :  { %v199_v52 = vadd.f32 %v198_v40, %v189_v46 }
  0xdc   :  { %v320_v40 = vpop.permute.xlu0 %319 }
  0xdd   :  { %v143_v38 = vpop.permute.xlu1 %142  ;;  %v209_v60 = vadd.f32 %v208_v57, %v199_v52 }
  0xde   :  { %v146_v48 = vadd.f32 %v143_v38, %v136_v42 }
  0xe0   :  { %v148_v58 = vmax.f32 %v146_v48, 0.0 }
  0xe1   :  { %v349_v57 = vpop.permute.xlu0 %348 }
  0xe2   :  { %v212_v53 = vpop.permute.xlu1 %211  ;;  %v237_v2 = vrot.slane %v148_v58, %v683_v45  ;;  %v247_v7 = vrot.slane %v148_v58, %v680_v44  ;;  %v257_v9 = vrot.slane %v148_v58, %v686_v47  ;;  %v267_v11 = vrot.slane %v148_v58, %v691_v51 }
  0xe3   :  { %v218_v59 = vmul.f32 %v217_v55, %v212_v53  ;;  %v277_v18 = vrot.slane %v148_v58, %v695_v54  ;;  %v297_v21 = vrot.slane %v148_v58, %v709_v43  ;;  %v287_v22 = vrot.slane %v148_v58, %v700_v0 }
  0xe4   :  { %v238_v6 = vmul.f32 %v237_v2, %v232_v4  ;;  %v268_v16 = vmul.f32 %v267_v11, %v262_v15  ;;  %v307_v29 = vrot.slane %v148_v58, %v714_v56 }
  0xe5   :  { %v219_v63 = vadd.f32 %v218_v59, %v209_v60  ;;  %v298_v27 = vmul.f32 %v297_v21, %v292_v23 }
  0xe7   :  { %v222_v62 = vpop.permute.xlu1 %221 }
  0xe8   :  { %v228_v1 = vmul.f32 %v227_v61, %v222_v62 }
  0xea   :  { %v229_v3 = vadd.f32 %v228_v1, %v219_v63  ;;  %v379_v63 = vpop.permute.xlu0 %378 }
  0xec   :  { %v242_v5 = vpop.permute.xlu1 %241  ;;  %v239_v8 = vadd.f32 %v238_v6, %v229_v3 }
  0xed   :  { %v248_v41 = vmul.f32 %v247_v7, %v242_v5 }
  0xef   :  { %v249_v12 = vadd.f32 %v248_v41, %v239_v8 }
  0xf1   :  { %v252_v10 = vpop.permute.xlu1 %251 }
  0xf2   :  { %v258_v13 = vmul.f32 %v257_v9, %v252_v10 }
  0xf4   :  { %v259_v14 = vadd.f32 %v258_v13, %v249_v12 }
  0xf6   :  { %v272_v17 = vpop.permute.xlu1 %271  ;;  %v269_v19 = vadd.f32 %v268_v16, %v259_v14 }
  0xf7   :  { %v278_v20 = vmul.f32 %v277_v18, %v272_v17 }
  0xf9   :  { %v279_v25 = vadd.f32 %v278_v20, %v269_v19 }
  0xfb   :  { %v282_v24 = vpop.permute.xlu1 %281 }
  0xfc   :  { %v288_v26 = vmul.f32 %v287_v22, %v282_v24 }
  0xfe   :  { %v289_v28 = vadd.f32 %v288_v26, %v279_v25 }
 0x100   :  { %v302_v30 = vpop.permute.xlu1 %301  ;;  %v299_v31 = vadd.f32 %v298_v27, %v289_v28 }
 0x101   :  { %v308_v32 = vmul.f32 %v307_v29, %v302_v30 }
 0x103   :  { %v309_v33 = vadd.f32 %v308_v32, %v299_v31 }
 0x105   :  { %v312_v34 = vpop.permute.xlu1 %311 }
 0x106   :  { %v314_v35 = vadd.f32 %v312_v34, %v309_v33 }
 0x108   :  { %v315_v36 = vmax.f32 %v314_v35, 0.0 }
 0x10a   :  { %v329_v37 = vpop.permute.xlu1 %328  ;;  %v325_v38 = vrot.slane %v315_v36, %v683_v45  ;;  %v334_v39 = vrot.slane %v315_v36, %v680_v44  ;;  %v344_v48 = vrot.slane %v315_v36, %v686_v47  ;;  %v354_v50 = vrot.slane %v315_v36, %v691_v51 }
 0x10b   :  { %v364_v60 = vrot.slane %v315_v36, %v695_v54  ;;  %v384_v44 = vrot.slane %v315_v36, %v709_v43  ;;  %v374_v62 = vrot.slane %v315_v36, %v700_v0  ;;  %v394_v4 = vrot.slane %v315_v36, %v714_v56 }
 0x10c   :  { %v326_v42 = vmul.f32 %v325_v38, %v320_v40  ;;  %v335_v46 = vmul.f32 %v334_v39, %v329_v37  ;;  %v355_v58 = vmul.f32 %v354_v50, %v349_v57 }
 0x10d   :  { %v385_v3 = vmul.f32 %v384_v44, %v379_v63 }
 0x10e   :  { %v336_v52 = vadd.f32 %v335_v46, %v326_v42 }
 0x10f   :  { %v339_v49 = vpop.permute.xlu1 %338 }
 0x110   :  { %v345_v53 = vmul.f32 %v344_v48, %v339_v49 }
 0x112   :  { %v346_v55 = vadd.f32 %v345_v53, %v336_v52 }
 0x114   :  { %v359_v59 = vpop.permute.xlu1 %358  ;;  %v356_v61 = vadd.f32 %v355_v58, %v346_v55 }
 0x115   :  { %v365_v45 = vmul.f32 %v364_v60, %v359_v59 }
 0x117   :  { %v366_v47 = vadd.f32 %v365_v45, %v356_v61 }
 0x119   :  { %v369_v1 = vpop.permute.xlu1 %368 }
 0x11a   :  { %v375_v2 = vmul.f32 %v374_v62, %v369_v1 }
 0x11c   :  { %v376_v51 = vadd.f32 %v375_v2, %v366_v47 }
 0x11e   :  { %v389_v5 = vpop.permute.xlu1 %388  ;;  %v386_v6 = vadd.f32 %v385_v3, %v376_v51 }
 0x11f   :  { %v395_v7 = vmul.f32 %v394_v4, %v389_v5 }
 0x121   :  { %v396_v8 = vadd.f32 %v395_v7, %v386_v6 }
 0x123   :  { %v399_v54 = vpop.permute.xlu1 %398 }
 0x124   :  { %v401_v41 = vadd.f32 %v399_v54, %v396_v8 }
 0x126   :  { %402 = vst [vmem:[#allocation7] sm:$0x3] %v401_v41 }
 0x127   :  { %550 = shalt.err (!%p547_p6)
}
 0x128   :  { %s551_s10 = scalar_lea.hbm %s747_s2, 32 }
 0x129   :  { %p552_p7 = scmp.ne.s32.totalorder %s747_s2, %s551_s10  ;;  %p555_p8 = scmp.lt.u32.totalorder %s551_s10, %s747_s2 }
 0x12b   :  { %p557_p9 = pnand %p555_p8, %p552_p7 }
 0x12d   :  { %560 = shalt.err (!%p557_p9)
}
 0x12e   :  { %412 = dma.vmem_to_hbm [thread:$0]  %s410_s6, 32, %s747_s2, [#allocation4]  }
 0x12f   :  { %565 = dma.done.wait [#allocation4], 32  }
 0x130   :  { %566 = vsyncadd [#allocation4], 4294967264 }
 0x131   :  { %416 = vsyncpa [#allocation3], 1 }
 0x132   :  { %417 = vsyncpa [#allocation6], 1 }
 0x133   :  { %418 = vsyncpa [#allocation4], 1 }

</bundles_post_ra>
